<compile_context>
chip_gen: v5e
topology: v5e:2x2
jax: 0.10.0
libtpu: 0.0.40
codegen_flags: <defaults>
</compile_context>

<pallas_src>
import jax
import jax.numpy as jnp
from jax.experimental import pallas as pl
from jax.experimental.pallas import tpu as pltpu


# ----------------------------------------------------------------------------
# Pallas kernels
# ----------------------------------------------------------------------------
def _conv1x1_kernel(x_ref, w_ref, b_ref, o_ref):
    """Channel-major pointwise conv on a spatial tile: o = W @ X + b.

    x_ref: (1, Cin, TS)   lane dim = spatial tile (lane dense)
    w_ref: (Cout, Cin)    resident across the grid
    b_ref: (Cout, 1)      resident across the grid
    o_ref: (1, Cout, TS)
    """
    acc = jnp.dot(w_ref[...], x_ref[0], preferred_element_type=jnp.float32)
    o_ref[0] = (acc + b_ref[...]).astype(o_ref.dtype)


def _head_resize_kernel(x_ref, w_ref, b_ref, rh_ref, rwt_ref, o_ref):
    """Fused RDnet head: 1x1 conv (Cin->Cout) + bilinear resize, for one image and
    one tile of output rows.

    x_ref:   (1, Cin, Hin, Win)  feature planes for image n (resident across row tiles)
    w_ref:   (Cout, Cin)         SMEM scalar table
    b_ref:   (Cout, 1)           SMEM scalar table
    rh_ref:  (TH, Hin)           rows of the vertical interpolation matrix
    rwt_ref: (Win, Wout)         transposed horizontal interpolation matrix (resident)
    o_ref:   (1, Cout, TH, Wout) lane dim = Wout (lane dense)
    """
    cout, cin = w_ref.shape
    _, _, hin, win = x_ref.shape
    rh = rh_ref[...]
    rwt = rwt_ref[...]
    for c in range(cout):                      # Cout is small & static -> unrolled
        # 1x1 conv for output channel c: bias + sum_k w[c,k] * x[k]  (VPU FMAs)
        plane = jnp.full((hin, win), b_ref[c, 0], dtype=jnp.float32)
        for k in range(cin):
            plane = plane + w_ref[c, k] * x_ref[0, k]
        # separable bilinear resize: Rh @ plane @ RwT  (two MXU matmuls)
        tmp = jnp.dot(rh, plane, preferred_element_type=jnp.float32)
        o_ref[0, c] = jnp.dot(tmp, rwt,
                              preferred_element_type=jnp.float32).astype(o_ref.dtype)


# ----------------------------------------------------------------------------
# Wrappers
# ----------------------------------------------------------------------------
def conv1x1(x_nchw, w, b, *, spatial_tile=4096):
    """nn.Conv2d(Cin, Cout, kernel_size=1) equivalent. w: (Cout, Cin), b: (Cout,)."""
    N, Cin, H, W = x_nchw.shape
    Cout = w.shape[0]
    HW = H * W
    x3 = x_nchw.reshape(N, Cin, HW)                 # NCHW is channel-major: free reshape
    ts = HW if HW <= spatial_tile else spatial_tile  # full dim or multiple of 128
    grid = (N, pl.cdiv(HW, ts))
    flops = 2 * N * HW * Cin * Cout
    bytes_accessed = 4 * (N * Cin * HW + N * Cout * HW + Cout * Cin + Cout)
    out = pl.pallas_call(
        _conv1x1_kernel,
        out_shape=jax.ShapeDtypeStruct((N, Cout, HW), jnp.float32),
        grid=grid,
        in_specs=[
            pl.BlockSpec((1, Cin, ts), lambda n, s: (n, 0, s)),
            pl.BlockSpec((Cout, Cin), lambda n, s: (0, 0)),
            pl.BlockSpec((Cout, 1), lambda n, s: (0, 0)),
        ],
        out_specs=pl.BlockSpec((1, Cout, ts), lambda n, s: (n, 0, s)),
        compiler_params=pltpu.CompilerParams(
            dimension_semantics=("parallel", "parallel"),
            vmem_limit_bytes=48 * 1024 * 1024,
        ),
        cost_estimate=pl.CostEstimate(flops=flops, transcendentals=0,
                                      bytes_accessed=bytes_accessed),
    )(x3, w, b.reshape(Cout, 1))
    return out.reshape(N, Cout, H, W)


def _interp_matrix(out_size, in_size):
    """Row-interpolation matrix matching F.interpolate(mode='bilinear',
    align_corners=False) source-index math."""
    scale = in_size / out_size
    dst = jnp.arange(out_size, dtype=jnp.float32)
    src = (dst + 0.5) * scale - 0.5
    src = jnp.maximum(src, 0.0)                     # PyTorch clamps negatives to 0
    i0 = jnp.minimum(jnp.floor(src).astype(jnp.int32), in_size - 1)
    i1 = jnp.minimum(i0 + 1, in_size - 1)
    frac = src - i0.astype(jnp.float32)
    rows = jnp.arange(out_size)
    m = jnp.zeros((out_size, in_size), jnp.float32)
    m = m.at[rows, i0].add(1.0 - frac)
    m = m.at[rows, i1].add(frac)
    return m


def conv1x1_bilinear(x_nchw, w, b, out_h, out_w, *, row_tile=512):
    """Fused nn.Conv2d(Cin, Cout, 1) + F.interpolate(size=(out_h, out_w),
    mode='bilinear', align_corners=False)."""
    N, Cin, Hin, Win = x_nchw.shape
    Cout = w.shape[0]
    rh = _interp_matrix(out_h, Hin)                    # (Hout, Hin)
    rwt = jnp.transpose(_interp_matrix(out_w, Win))    # (Win, Wout)
    th = out_h if out_h <= row_tile else row_tile      # full dim or multiple of 8
    grid = (N, pl.cdiv(out_h, th))
    flops = 2 * N * Cout * (Cin * Hin * Win + out_h * Hin * Win + out_h * Win * out_w)
    bytes_accessed = 4 * (N * Cin * Hin * Win + N * Cout * out_h * out_w
                          + Cout * Cin + Cout + int(rh.size) + int(rwt.size))
    out = pl.pallas_call(
        _head_resize_kernel,
        out_shape=jax.ShapeDtypeStruct((N, Cout, out_h, out_w), jnp.float32),
        grid=grid,
        in_specs=[
            pl.BlockSpec((1, Cin, Hin, Win), lambda n, t: (n, 0, 0, 0)),
            pl.BlockSpec((Cout, Cin), lambda n, t: (0, 0),
                         memory_space=pltpu.MemorySpace.SMEM),
            pl.BlockSpec((Cout, 1), lambda n, t: (0, 0),
                         memory_space=pltpu.MemorySpace.SMEM),
            pl.BlockSpec((th, Hin), lambda n, t: (t, 0)),
            pl.BlockSpec((Win, out_w), lambda n, t: (0, 0)),
        ],
        out_specs=pl.BlockSpec((1, Cout, th, out_w), lambda n, t: (n, 0, t, 0)),
        compiler_params=pltpu.CompilerParams(
            dimension_semantics=("parallel", "parallel"),
            vmem_limit_bytes=48 * 1024 * 1024,
        ),
        cost_estimate=pl.CostEstimate(flops=flops, transcendentals=0,
                                      bytes_accessed=bytes_accessed),
    )(x_nchw, w, b.reshape(Cout, 1), rh, rwt)
    return out


def rdnet_forward(x, w_stub, b_stub, w_head, b_head):
    """RDnet.forward: deeplabv3(x) -> con1x1 -> bilinear resize back to (h, w)."""
    N, Cin, H, W = x.shape

    # TODO(synk): the real DeepLabv3 backbone (ResNet + ASPP loaded from a .pth
    # checkpoint) has no clean in-script Pallas equivalent; it is represented by a
    # deterministic stand-in (2x2 average pool + Pallas 1x1 projection) producing the
    # expected (N, 20, h', w') feature-map interface.
    xd = x.reshape(N, Cin, H // 2, 2, W // 2, 2).mean(axis=(3, 5))
    feat = conv1x1(xd, w_stub, b_stub)                 # (N, 20, H/2, W/2)

    # RDnet head: self.con1x1 + F.interpolate fused into ONE Pallas kernel
    # (valid fusion: nothing sits between them in the reference forward).
    out = conv1x1_bilinear(feat, w_head, b_head, H, W)  # (N, 3, H, W)
    return out


# ----------------------------------------------------------------------------
# Main
# ----------------------------------------------------------------------------
if __name__ == "__main__":
    key = jax.random.PRNGKey(0)
    k1, k2, k3, k4, k5 = jax.random.split(key, 5)

    N, Cin, H, W = 2, 3, 16, 16
    x = jax.random.normal(k1, (N, Cin, H, W), jnp.float32)

    # deeplabv3 stand-in projection parameters (3 -> 20)
    w_stub = jax.random.normal(k2, (20, 3), jnp.float32) * 0.1
    b_stub = jax.random.normal(k3, (20,), jnp.float32) * 0.1
    # self.con1x1 = nn.Conv2d(20, 3, kernel_size=1) parameters
    w_head = jax.random.normal(k4, (3, 20), jnp.float32) * 0.1
    b_head = jax.random.normal(k5, (3,), jnp.float32) * 0.1

    out = rdnet_forward(x, w_stub, b_stub, w_head, b_head)
    out = jax.block_until_ready(out)
    assert out.shape == (N, 3, H, W), out.shape
    assert out.dtype == jnp.float32

    # Pure-JAX reference of the same math (sanity-check the Pallas plumbing).
    hp = jax.lax.Precision.HIGHEST
    xd = x.reshape(N, Cin, H // 2, 2, W // 2, 2).mean(axis=(3, 5))
    feat_ref = jnp.einsum('oc,nchw->nohw', w_stub, xd, precision=hp) \
        + b_stub[None, :, None, None]
    log_ref = jnp.einsum('oc,nchw->nohw', w_head, feat_ref, precision=hp) \
        + b_head[None, :, None, None]
    rh = _interp_matrix(H, H // 2)
    rw = _interp_matrix(W, W // 2)
    ref = jnp.einsum('oh,nchw,pw->ncop', rh, log_ref, rw, precision=hp)
    assert jnp.allclose(out, ref, atol=1e-2), float(jnp.max(jnp.abs(out - ref)))

    print("KERNEL_OK")
</pallas_src>

<mosaic_0001>
module attributes {stable_mosaic.version = 11 : i64} {
  func.func @_conv1x1_kernel(%arg0: i32, %arg1: i32, %arg2: memref<1x3x64xf32, #tpu.memory_space<vmem>>, %arg3: memref<20x3xf32, #tpu.memory_space<vmem>>, %arg4: memref<20x1xf32, #tpu.memory_space<vmem>>, %arg5: memref<1x20x64xf32, #tpu.memory_space<vmem>>) attributes {dimension_semantics = [#tpu.dimension_semantics<parallel>, #tpu.dimension_semantics<parallel>], iteration_bounds = array<i64: 2, 1>, scalar_prefetch = 0 : i64, scratch_operands = 0 : i64, tpu.core_type = #tpu.core_type<tc>, window_params = [{transform_indices = @transform_0, window_bounds = array<i64: 1, 3, 64>}, {pipeline_mode = #tpu.pipeline_mode<synchronous>, transform_indices = @transform_1, window_bounds = array<i64: 20, 3>}, {pipeline_mode = #tpu.pipeline_mode<synchronous>, transform_indices = @transform_2, window_bounds = array<i64: 20, 1>}, {transform_indices = @transform_3, window_bounds = array<i64: 1, 20, 64>}]} {
    %c0 = arith.constant 0 : index
    %c0_0 = arith.constant 0 : index
    %0 = vector.load %arg3[%c0, %c0_0] : memref<20x3xf32, #tpu.memory_space<vmem>>, vector<20x3xf32>
    %c0_1 = arith.constant 0 : index
    %c0_2 = arith.constant 0 : index
    %c0_3 = arith.constant 0 : index
    %1 = vector.load %arg2[%c0_1, %c0_2, %c0_3] : memref<1x3x64xf32, #tpu.memory_space<vmem>>, vector<1x3x64xf32>
    %2 = vector.shape_cast %1 : vector<1x3x64xf32> to vector<3x64xf32>
    %cst = arith.constant dense<0.000000e+00> : vector<20x64xf32>
    %3 = tpu.matmul %0, %2, %cst {dimension_numbers = #tpu.dot_dimension_numbers<[1], [0], [0], [1], [0, 0, 1, 1], [], []>} : vector<20x3xf32>, vector<3x64xf32>, vector<20x64xf32> -> vector<20x64xf32>
    %c0_4 = arith.constant 0 : index
    %c0_5 = arith.constant 0 : index
    %4 = vector.load %arg4[%c0_4, %c0_5] : memref<20x1xf32, #tpu.memory_space<vmem>>, vector<20x1xf32>
    %5 = vector.broadcast %4 : vector<20x1xf32> to vector<20x64xf32>
    %6 = arith.addf %3, %5 : vector<20x64xf32>
    %c0_6 = arith.constant 0 : index
    %c0_7 = arith.constant 0 : index
    %c0_8 = arith.constant 0 : index
    %7 = vector.load %arg5[%c0_6, %c0_7, %c0_8] : memref<1x20x64xf32, #tpu.memory_space<vmem>>, vector<1x20x64xf32>
    %8 = vector.shape_cast %7 : vector<1x20x64xf32> to vector<20x64xf32>
    %9 = vector.shape_cast %6 : vector<20x64xf32> to vector<1x20x64xf32>
    tpu.vector_store %arg5[%c0_6, %c0_7, %c0_8], %9 {strides = array<i32>} : memref<1x20x64xf32, #tpu.memory_space<vmem>>, vector<1x20x64xf32>,
    return
  }
  func.func @transform_0(%arg0: i32, %arg1: i32) -> (i32, i32, i32) {
    %c0_i32 = arith.constant 0 : i32
    %c0_i32_0 = arith.constant 0 : i32
    return %arg0, %c0_i32, %arg1 : i32, i32, i32
  }
  func.func @transform_1(%arg0: i32, %arg1: i32) -> (i32, i32) {
    %c0_i32 = arith.constant 0 : i32
    %c0_i32_0 = arith.constant 0 : i32
    %c0_i32_1 = arith.constant 0 : i32
    return %c0_i32, %c0_i32_0 : i32, i32
  }
  func.func @transform_2(%arg0: i32, %arg1: i32) -> (i32, i32) {
    %c0_i32 = arith.constant 0 : i32
    %c0_i32_0 = arith.constant 0 : i32
    %c0_i32_1 = arith.constant 0 : i32
    return %c0_i32, %c0_i32_0 : i32, i32
  }
  func.func @transform_3(%arg0: i32, %arg1: i32) -> (i32, i32, i32) {
    %c0_i32 = arith.constant 0 : i32
    %c0_i32_0 = arith.constant 0 : i32
    return %arg0, %c0_i32, %arg1 : i32, i32, i32
  }
}

</mosaic_0001>

<bundles_post_ra>
// kernel: tpu_custom_call.1
= control target key start
LH: loop header
LB: loop body
LE: loop exit
PB: predicated region body
PF: predicated region fallthrough
CT: control target
= control target key end

     0   :  { %s434_s12 = smov 0   ;;  %s436_s13 = smov 0   ;;  %s485_s0 = inlined_call_operand.vmem [shape: f32[2,3,64], index: 0, kind: input, shape index: {}]   ;;  %s486_s1 = inlined_call_operand.vmem [shape: f32[20,3], index: 1, kind: input, shape index: {}]   ;;  %s487_s2 = inlined_call_operand.vmem [shape: f32[20,1], index: 2, kind: input, shape index: {}]   ;;  %s488_s3 = inlined_call_operand.vmem [shape: f32[2,20,64], index: 3, kind: output, shape index: {}]  }
   0x1   :  { %s438_s14 = smov 0  }
   0x2 LB: > { %s25_s15 = sadd.s32 1, %s407_s13  ;;  %p350_p0 = scmp.ge.s32.totalorder %s411_s14, 1  ;;  %s411_s14 = sphi %s438_s14, %s13_s14   ;;  %s407_s13 = sphi %s436_s13, %s490_s13   ;;  %s403_s12 = sphi %s434_s12, %s489_s12  }
   0x3   : > { %p27_p1 = scmp.ge.s32.totalorder %s25_s15, 2  ;;  %p155_p2 = scmp.lt.s32.totalorder %s411_s14, 3 }
   0x5   : > { %s492_s15 = smov (%p27_p1, %s25_s15), 0  ;;  %p156_p3 = pnand %p350_p0, %p155_p2 }
   0x6   : > { %p184_p4 = scmp.lt.s32.totalorder (!%p156_p3), %s403_s12, 1 }
   0x7   : > { %159 = sbr.rel (%p156_p3) target bundleno = 153 (0x99), region = 32 }
   0xc   : > { %v413_v0 = vmov 0   ;;  %v203_v1 = vld [vmem:[%s487_s2] sm:$0xff]  ;;  %s494_s12 = smov (!%p184_p4, %s403_s12), 1  ;;  %v205_v2 = vld [vmem:[%s487_s2 + $0x10] sm:$0xf]  ;;  %vm231_vm0 = vcmask 1042432  }
   0xd   : > { %387 = vset.pattern.permute.xlu0 %v413_v0  ;;  %388 = vset.pattern.permute.xlu1 %v413_v0  ;;  %s351_s20 = sshll.u32 %s494_s12, 2  ;;  %v199_v3 = vld [vmem:[%s486_s1] sm:$0xff]  ;;  %vm221_vm1 = vcmask 23552   ;;  %v200_v5 = vld [vmem:[%s486_s1 + $0x8] sm:$0xff]  ;;  %v201_v6 = vld [vmem:[%s486_s1 + $0x10] sm:$0xf] }
   0xe   : > { %208 = vperm.xlu0 %387, %v203_v1   ;;  %218 = vperm.xlu1 %388, %v205_v2   ;;  %s190_s23 = scalar_lea.vmem %s485_s0, %s351_s20  ;;  %v204_v7 = vld [vmem:[%s487_s2 + $0x8] sm:$0xff]  ;;  %s361_s5 = smul.u32 24, %s494_s12  ;;  %vm261_vm2 = vcmask 523264   ;;  %vm264_vm3 = vcmask 519168  }
   0xf   : > { %v202_v4 = vld [vmem:[%s190_s23] sm:$0x7] }
  0x10   : > { %353 = vmatpush.msk.msra.mxu0 %vm231_vm0, %v202_v4  ;;  %359 = vmatpush.msk.msra.mxu1 %vm231_vm0, %v202_v4  ;;  %s198_s8 = scalar_lea.vmem %s488_s3, %s361_s5 }
  0x11   : > { %360 = vmatpush.msk.msra.mxu2 %vm231_vm0, %v202_v4  ;;  %354 = vmatmul.msk.f32.vlgmr.msra.gmra.mxu0 %vm221_vm1, %v199_v3 }
  0x12   : > { %355 = vmatmul.msk.f32.vlgmr.msra.gmra.mxu1 %vm221_vm1, %v200_v5  ;;  %356 = vmatmul.msk.f32.vlgmr.msra.gmra.mxu2 %vm221_vm1, %v201_v6 }
  0x16   : > { %213 = vperm.xlu0 %387, %v204_v7  }
  0x80   : > { %v209_v8 = vpop.permute.xlu0 %208  ;;  %v219_v14 = vpop.permute.xlu1 %218 }
  0x88   : > { %v214_v10 = vpop.permute.xlu0 %213 }
  0x8e   : > { %v252_v9 = vpop.f32.mrf.mxu0 }
  0x8f   : > { %v253_v11 = vadd.f32 %v252_v9, %v209_v8  ;;  %v255_v12 = vpop.f32.mrf.mxu1 }
  0x90   : > { %v256_v13 = vadd.f32 %v255_v12, %v214_v10 }
  0x91   : > { %262 = vst.msk [vmem:[%s198_s8] sm:$0xff] %vm261_vm2, %v253_v11 }
  0x92   : > { %263 = vst.msk [vmem:[%s198_s8 + $0x8] sm:$0xff] %vm261_vm2, %v256_v13 }
  0x95   : > { %v258_v15 = vpop.f32.mrf.mxu2 }
  0x96   : > { %v259_v16 = vadd.f32 %v258_v15, %v219_v14 }
  0x98   : > { %265 = vst.msk [vmem:[%s198_s8 + $0x10] sm:$0xf] %vm264_vm3, %v259_v16 }
  0x99 PF: > { %s13_s14 = sadd.s32 1, %s411_s14   ;;  %s489_s12 = smov %s407_s13 }
  0x9a   : > { %p10_p5 = scmp.ge.s32.totalorder %s13_s14, 4   ;;  %s490_s13 = smov %s492_s15 }
  0x9c   :  { %12 = sbr.rel (!%p10_p5) target bundleno = 2 (0x2), region = 62 }

</bundles_post_ra>
